<compile_context>
chip_gen: v6e
topology: v6e:2x2x1
jax: 0.10.0
libtpu: 0.0.40
codegen_flags: <defaults>
</compile_context>

<pallas_src>
import numpy as np

import jax
import jax.numpy as jnp
from jax import lax
from jax.experimental import pallas as pl
from jax.experimental.pallas import tpu as pltpu


def _assemble_kernel(idx_ref, x_ref, out_ref):
    # idx_ref: (Tt, 1) int32  -- source row per output token of this tile:
    #                            -1 -> zeros, 0..n_src-1 -> row of the augmented x slab
    #                            (the last slab row is the patch embedding).
    # x_ref:   (Bb, n_src, D) -- visible tokens + patch-embedding row, VMEM-resident
    #                            across token tiles (block index constant over ti).
    # out_ref: (Bb, Tt, D)
    idx = idx_ref[...]                                          # (Tt, 1)
    n_src = x_ref.shape[1]
    tt = idx.shape[0]

    # One-hot gather of source rows via a small MXU matmul.  Rows with idx == -1
    # (untouched tokens and tile padding) produce an all-zero one-hot row -> zeros.
    one_hot = (idx == lax.broadcasted_iota(jnp.int32, (tt, n_src), 1)).astype(x_ref.dtype)

    # f32 inputs: request full precision so visible tokens pass through exactly.
    # bf16 inputs: default (native single-pass bf16 MXU path), gather is exact anyway.
    prec = lax.Precision.HIGHEST if x_ref.dtype == jnp.float32 else lax.Precision.DEFAULT

    for bi in range(x_ref.shape[0]):                            # static, small Bb unroll
        out_ref[bi] = jnp.dot(
            one_hot, x_ref[bi],
            preferred_element_type=jnp.float32,
            precision=prec,
        ).astype(out_ref.dtype)


def unmask_embedding_forward(x, sample_index, mask_index, conv_w, conv_b,
                             input_size, patch_size, *, token_tile=1024):
    """x: (b, 1+len(sample_index), embed_dim). Returns (b, 1+num_patches, embed_dim)."""
    b, n_x, embed_dim = x.shape
    out_ch = conv_w.shape[0]
    if isinstance(input_size, tuple):
        H, W = input_size
    else:
        H, W = input_size, input_size
    hp, wp = H // patch_size, W // patch_size
    num_patches = hp * wp
    T = 1 + num_patches
    assert n_x == 1 + len(sample_index)
    itemsize = jnp.dtype(x.dtype).itemsize

    # --- glue: conv on a constant image == per-channel scalar -------------------------
    v = (127.0 / 255.0 - 0.3286797) / 0.3286797
    chan_val = (v * conv_w.reshape(out_ch, -1).sum(axis=1).astype(jnp.float32)
                + conv_b.astype(jnp.float32))                          # (out_ch,)
    d_idx = np.arange(embed_dim)
    # raw NCHW .view(b,-1,c)[0,0,:] quirk: element d <- channel d // num_patches
    pe = chan_val[d_idx // num_patches].astype(x.dtype).reshape(1, 1, embed_dim)

    # --- glue: augmented source slab = visible tokens + patch-embedding row -----------
    x_aug = jnp.concatenate([x, jnp.broadcast_to(pe, (b, 1, embed_dim))], axis=1)
    n_src = n_x + 1                                                    # pe row index = n_x

    # --- glue: token-tile sizing (dtype-aware sublane rounding) -----------------------
    sub = {4: 8, 2: 16, 1: 32}.get(itemsize, 8)
    cap = max(sub, (token_tile // sub) * sub)
    Tt = min(-(-T // sub) * sub, cap)                                  # multiple of sub
    n_tiles = -(-T // Tt)
    T_pad = n_tiles * Tt

    # --- glue: per-token source-row index table (NumPy -> baked constant) -------------
    idx_np = np.full((T_pad, 1), -1, np.int32)
    x_token_pos = np.asarray([0] + list(sample_index), np.int32)
    idx_np[x_token_pos, 0] = np.arange(n_x, dtype=np.int32)
    idx_np[np.asarray(list(mask_index), np.int32), 0] = n_x            # mask overrides sample
    idx = jnp.asarray(idx_np)

    # --- glue: batch-block size (VMEM budget + keep >=2 grid steps for v7x) -----------
    def _block_bytes(bb):
        out_blk = bb * Tt * embed_dim * itemsize
        x_blk = bb * n_src * embed_dim * itemsize
        return 2 * (out_blk + x_blk)                                   # double-buffered

    budget = 8 * 1024 * 1024       # conservative: fits v5e 16 MiB / v7x 32 MiB scoped VMEM
    divisors = [d for d in range(1, b + 1) if b % d == 0]
    Bb = 1
    for d in divisors:
        if _block_bytes(d) <= budget:
            Bb = d
    if (b // Bb) * n_tiles < 2 and b >= 2:                             # 2 TCs on v7x
        Bb = max(d for d in divisors if d <= b // 2)

    cost = pl.CostEstimate(
        flops=2 * b * T_pad * n_src * embed_dim,
        transcendentals=0,
        bytes_accessed=(b * T * embed_dim + b * n_src * embed_dim) * itemsize + T_pad * 4,
    )

    # --- single Pallas kernel: batch/token-tiled gather directly in (b, T, D) layout --
    out = pl.pallas_call(
        _assemble_kernel,
        out_shape=jax.ShapeDtypeStruct((b, T, embed_dim), x.dtype),
        grid_spec=pltpu.PrefetchScalarGridSpec(
            num_scalar_prefetch=0,
            grid=(b // Bb, n_tiles),
            in_specs=[
                pl.BlockSpec((Tt, 1), lambda bi, ti: (ti, 0)),
                pl.BlockSpec((Bb, n_src, embed_dim), lambda bi, ti: (bi, 0, 0)),
            ],
            out_specs=pl.BlockSpec((Bb, Tt, embed_dim), lambda bi, ti: (bi, ti, 0)),
        ),
        compiler_params=pltpu.CompilerParams(
            dimension_semantics=("parallel", "parallel")),
        cost_estimate=cost,
    )(idx, x_aug)
    return out


if __name__ == "__main__":
    key = jax.random.PRNGKey(0)
    b = 2
    in_chans = 4
    embed_dim = 32
    patch_size = 4
    input_size = (16, 16)
    num_patches = (input_size[0] // patch_size) * (input_size[1] // patch_size)  # 16
    T = 1 + num_patches

    sample_index = [2, 5, 7, 9, 11, 14, 16]                 # visible patch tokens
    mask_index = [1, 3, 4, 6, 8, 10, 12, 13, 15]            # masked patch tokens

    kw_key, kx_key, kb_key = jax.random.split(key, 3)
    conv_w = jax.random.normal(
        kw_key, (embed_dim, in_chans, patch_size, patch_size), jnp.float32) * 0.02
    conv_b = jax.random.normal(kb_key, (embed_dim,), jnp.float32) * 0.02
    x = jax.random.normal(kx_key, (b, 1 + len(sample_index), embed_dim), jnp.float32)

    out = unmask_embedding_forward(x, sample_index, mask_index, conv_w, conv_b,
                                   input_size, patch_size)
    out = jax.block_until_ready(out)

    # ---- pure-JAX reference of the PyTorch forward ----
    v = (127.0 / 255.0 - 0.3286797) / 0.3286797
    raw = jnp.full((1, in_chans, input_size[0], input_size[1]), v, jnp.float32)
    emb = lax.conv_general_dilated(
        raw, conv_w, (patch_size, patch_size), "VALID",
        dimension_numbers=("NCHW", "OIHW", "NCHW")) + conv_b[None, :, None, None]
    pe_vec = emb.reshape(1, -1, embed_dim)[0, 0, :]          # same as torch .view(b,-1,c)[0,0,:]
    x_tokens = jnp.concatenate(
        [jnp.zeros((1,), jnp.int32), jnp.asarray(sample_index, jnp.int32)])
    ref = jnp.zeros((b, T, embed_dim), jnp.float32)
    ref = ref.at[:, x_tokens, :].set(x)
    ref = ref.at[:, jnp.asarray(mask_index, jnp.int32), :].set(pe_vec)

    assert out.shape == (b, T, embed_dim), out.shape
    err = float(jnp.max(jnp.abs(out - ref)))
    assert jnp.allclose(out, ref, rtol=1e-5, atol=1e-5), f"max abs err {err}"
    print("KERNEL_OK")
</pallas_src>

<mosaic_0001>
module attributes {stable_mosaic.version = 11 : i64} {
  func.func @_assemble_kernel(%arg0: i32, %arg1: i32, %arg2: memref<24x1xi32, #tpu.memory_space<vmem>>, %arg3: memref<1x9x32xf32, #tpu.memory_space<vmem>>, %arg4: memref<1x24x32xf32, #tpu.memory_space<vmem>>) attributes {dimension_semantics = [#tpu.dimension_semantics<parallel>, #tpu.dimension_semantics<parallel>], iteration_bounds = array<i64: 2, 1>, scalar_prefetch = 0 : i64, scratch_operands = 0 : i64, tpu.core_type = #tpu.core_type<tc>, window_params = [{transform_indices = @transform_0, window_bounds = array<i64: 24, 1>}, {transform_indices = @transform_1, window_bounds = array<i64: 1, 9, 32>}, {transform_indices = @transform_2, window_bounds = array<i64: 1, 24, 32>}]} {
    %c0 = arith.constant 0 : index
    %c0_0 = arith.constant 0 : index
    %0 = vector.load %arg2[%c0, %c0_0] : memref<24x1xi32, #tpu.memory_space<vmem>>, vector<24x1xi32>
    %1 = tpu.iota {dimensions = array<i32: 1>} : vector<24x9xi32>
    %2 = vector.broadcast %0 : vector<24x1xi32> to vector<24x9xi32>
    %3 = arith.cmpi eq, %2, %1 : vector<24x9xi32>
    %4 = arith.extui %3 : vector<24x9xi1> to vector<24x9xi32>
    %5 = arith.sitofp %4 : vector<24x9xi32> to vector<24x9xf32>
    %c0_1 = arith.constant 0 : index
    %c0_2 = arith.constant 0 : index
    %c0_3 = arith.constant 0 : index
    %6 = vector.load %arg3[%c0_1, %c0_2, %c0_3] : memref<1x9x32xf32, #tpu.memory_space<vmem>>, vector<1x9x32xf32>
    %7 = vector.shape_cast %6 : vector<1x9x32xf32> to vector<9x32xf32>
    %cst = arith.constant dense<0.000000e+00> : vector<24x32xf32>
    %8 = tpu.matmul %5, %7, %cst {dimension_numbers = #tpu.dot_dimension_numbers<[1], [0], [0], [1], [0, 0, 1, 1], [], []>, precision = #tpu.contract_precision<fp32>} : vector<24x9xf32>, vector<9x32xf32>, vector<24x32xf32> -> vector<24x32xf32>
    %c0_4 = arith.constant 0 : index
    %c0_5 = arith.constant 0 : index
    %c0_6 = arith.constant 0 : index
    %9 = vector.load %arg4[%c0_4, %c0_5, %c0_6] : memref<1x24x32xf32, #tpu.memory_space<vmem>>, vector<1x24x32xf32>
    %10 = vector.shape_cast %9 : vector<1x24x32xf32> to vector<24x32xf32>
    %11 = vector.shape_cast %8 : vector<24x32xf32> to vector<1x24x32xf32>
    tpu.vector_store %arg4[%c0_4, %c0_5, %c0_6], %11 {strides = array<i32>} : memref<1x24x32xf32, #tpu.memory_space<vmem>>, vector<1x24x32xf32>,
    return
  }
  func.func @transform_0(%arg0: i32, %arg1: i32) -> (i32, i32) {
    %c0_i32 = arith.constant 0 : i32
    %c0_i32_0 = arith.constant 0 : i32
    return %arg1, %c0_i32 : i32, i32
  }
  func.func @transform_1(%arg0: i32, %arg1: i32) -> (i32, i32, i32) {
    %c0_i32 = arith.constant 0 : i32
    %c0_i32_0 = arith.constant 0 : i32
    %c0_i32_1 = arith.constant 0 : i32
    return %arg0, %c0_i32, %c0_i32_0 : i32, i32, i32
  }
  func.func @transform_2(%arg0: i32, %arg1: i32) -> (i32, i32, i32) {
    %c0_i32 = arith.constant 0 : i32
    %c0_i32_0 = arith.constant 0 : i32
    return %arg0, %arg1, %c0_i32 : i32, i32, i32
  }
}

</mosaic_0001>

<bundles_post_ra>
// kernel: tpu_custom_call.1
= control target key start
LH: loop header
LB: loop body
LE: loop exit
PB: predicated region body
PF: predicated region fallthrough
CT: control target
= control target key end

     0   :  { %s1077_s9 = smov 0   ;;  %s1079_s10 = smov 0   ;;  %s1231_s0 = inlined_call_operand.vmem [shape: s32[24,1], index: 0, kind: input, shape index: {}]   ;;  %s1232_s1 = inlined_call_operand.vmem [shape: f32[2,9,32], index: 1, kind: input, shape index: {}]   ;;  %s1233_s2 = inlined_call_operand.vmem [shape: f32[2,17,32], index: 2, kind: output, shape index: {}]  }
   0x1   :  { %s1081_s11 = smov 0  }
   0x2 LB: > { %s24_s12 = sadd.s32 1, %s1053_s10  ;;  %p878_p0 = scmp.ge.s32.totalorder %s1057_s11, 1  ;;  %s1057_s11 = sphi %s1081_s11, %s12_s11   ;;  %s1053_s10 = sphi %s1079_s10, %s1235_s10   ;;  %s1049_s9 = sphi %s1077_s9, %s1234_s9  }
   0x3   : > { %p26_p1 = scmp.ge.s32.totalorder %s24_s12, 2  ;;  %p137_p2 = scmp.lt.s32.totalorder %s1057_s11, 3 }
   0x5   : > { %s1237_s12 = smov (%p26_p1, %s24_s12), 0  ;;  %p138_p3 = pnand %p878_p0, %p137_p2 }
   0x6   : > { %p174_p4 = scmp.lt.s32.totalorder (!%p138_p3), %s1049_s9, 1 }
   0x7   : > { %141 = sbr.rel (%p138_p3) target bundleno = 379 (0x17b), region = 28 }
   0xc   : > { %v189_v0 = vld [vmem:[%s1231_s0] sm:$0xff]  ;;  %v191_v1 = vld [vmem:[%s1231_s0 + $0x10] sm:$0xff]  ;;  %v1059_v2 = vmov 0   ;;  %v190_v3 = vld [vmem:[%s1231_s0 + $0x8] sm:$0xff]  ;;  %v1060_v4 = vmov 0.0   ;;  %s1239_s9 = smov (!%p174_p4, %s1049_s9), 1  ;;  %v192_v18 = vlaneseq }
   0xd   : > { %1033 = vset.pattern.permute.xlu0 %v1059_v2  ;;  %1034 = vset.pattern.permute.xlu1 %v1059_v2  ;;  %vm1061_vm0 = vmmov 0   ;;  %s896_s19 = sshll.u32 %s1239_s9, 4  ;;  %vm224_vm1 = vcmask 1040384   ;;  %vm214_vm2 = vcmask 72704   ;;  %s1005_s23 = smul.u32 24, %s1239_s9  ;;  %vm773_vm6 = vcmask 261120  }
   0xe   : > { %195 = vperm.xlu0 %1033, %v189_v0   ;;  %201 = vperm.xlu1 %1034, %v191_v1   ;;  %s178_s22 = scalar_lea.vmem %s1232_s1, %s896_s19  ;;  %v193_v19 = vand.u32 127, %v192_v18 }
   0xf   : > { %940 = vmatprep.subr.mxu1 %v1060_v4  ;;  %944 = vmatprep.mubr.msk.f32.mxu1 %vm1061_vm0, %v1060_v4  ;;  %v213_v5 = vld [vmem:[%s178_s22 + $0x8] sm:$0x1]  ;;  %v212_v6 = vld [vmem:[%s178_s22] sm:$0xff]  ;;  %s187_s26 = scalar_lea.vmem %s1233_s2, %s1005_s23 }
  0x10   : > { %927 = vmatprep.subr.mxu0 %v1060_v4  ;;  %931 = vmatprep.mubr.msk.f32.mxu0 %vm1061_vm0, %v1060_v4  ;;  %v226_v7 = vsel %vm224_vm1, %v213_v5, 0  ;;  %v1116_v8 = vand.u32 4294901760, %v212_v6 }
  0x11   : > { %v1118_v9 = vand.u32 4294901760, %v226_v7 }
  0x12   : > { %198 = vperm.xlu0 %1033, %v190_v3   ;;  %v1121_v10 = vsub.f32 %v212_v6, %v1116_v8 }
  0x13   : > { %v1124_v11 = vsub.f32 %v226_v7, %v1118_v9  ;;  %928 = vmatpush3.msra.mxu0 %v1118_v9 }
  0x14   : > { %v363_v12 = vand.u32 4294901760, %v1121_v10  ;;  %929 = vmatprep.subr.mxu0 %v1060_v4 }
  0x15   : > { %v356_v13 = vand.u32 4294901760, %v1124_v11  ;;  %930 = vmatpush3.msra.mxu0 %v1116_v8 }
  0x16   : > { %v364_v14 = vsub.f32 %v1121_v10, %v363_v12  ;;  %953 = vmatprep.subr.mxu0 %v1060_v4 }
  0x17   : > { %v357_v15 = vsub.f32 %v1124_v11, %v356_v13 }
  0x18   : > { %v365_v17 = vand.u32 4294901760, %v364_v14 }
  0x19   : > { %v358_v16 = vand.u32 4294901760, %v357_v15 }
  0x1b   : > { %941 = vmatpush3.msra.mxu1 %v358_v16 }
  0x1c   : > { %942 = vmatprep.subr.mxu1 %v1060_v4 }
  0x1d   : > { %943 = vmatpush3.msra.mxu1 %v365_v17 }
  0x1e   : > { %966 = vmatprep.subr.mxu1 %v1060_v4 }
  0x89   : > { %v196_v20 = vpop.permute.xlu0 %195  ;;  %v202_v21 = vpop.permute.xlu1 %201 }
  0x8a   : > { %vm203_vm3 = vcmp.eq.s32.totalorder %v196_v20, %v193_v19  ;;  %vm205_vm4 = vcmp.eq.s32.totalorder %v202_v21, %v193_v19 }
  0x8b   : > { %v1141_v22 = vsel %vm203_vm3, 1.0, %v1060_v4  ;;  %v1144_v23 = vsel %vm205_vm4, 1.0, %v1060_v4 }
  0x8c   : > { %v216_v24 = vsel %vm214_vm2, %v1141_v22, 0  ;;  %945 = vmatmul.mubr.msk.f32.vlgmr.msra.gmra.mxu1 %vm214_vm2, %v1141_v22  ;;  %v222_v25 = vsel %vm214_vm2, %v1144_v23, 0 }
  0x8d   : > { %v296_v26 = vsub.f32 %v216_v24, %v216_v24  ;;  %v199_v27 = vpop.permute.xlu0 %198  ;;  %947 = vmatprep.mubr.msk.f32.mxu1 %vm1061_vm0, %v1060_v4  ;;  %967 = vmatpush3.msra.mxu1 %v1118_v9  ;;  %v316_v29 = vsub.f32 %v222_v25, %v222_v25 }
  0x8e   : > { %vm204_vm5 = vcmp.eq.s32.totalorder %v199_v27, %v193_v19  ;;  %968 = vmatprep.subr.mxu1 %v1060_v4 }
  0x8f   : > { %v883_v28 = vsel %vm204_vm5, 1.0, %v1060_v4  ;;  %v297_v30 = vand.u32 4294901760, %v296_v26  ;;  %969 = vmatpush3.msra.mxu1 %v1116_v8  ;;  %v317_v36 = vand.u32 4294901760, %v316_v29 }
  0x90   : > { %v219_v31 = vsel %vm214_vm2, %v883_v28, 0  ;;  %948 = vmatmul.mubr.msk.f32.gmra.mxu1 %vm214_vm2, %v883_v28  ;;  %992 = vmatprep.subr.mxu1 %v1060_v4 }
  0x91   : > { %v306_v32 = vsub.f32 %v219_v31, %v219_v31  ;;  %950 = vmatprep.mubr.msk.f32.mxu1 %vm1061_vm0, %v1060_v4  ;;  %v298_v33 = vsub.f32 %v296_v26, %v297_v30  ;;  %v318_v39 = vsub.f32 %v316_v29, %v317_v36 }
  0x93   : > { %v299_v34 = vand.u32 4294901760, %v298_v33  ;;  %v307_v35 = vand.u32 4294901760, %v306_v32  ;;  %v319_v40 = vand.u32 4294901760, %v318_v39 }
  0x94   : > { %951 = vmatmul.mubr.msk.f32.gmra.mxu1 %vm214_vm2, %v1144_v23 }
  0x95   : > { %932 = vmatmul.mubr.f32.vlgmr.msra.gmra.mxu0 %v299_v34  ;;  %970 = vmatprep.mubr.msk.f32.mxu1 %vm1061_vm0, %v1060_v4  ;;  %v308_v37 = vsub.f32 %v306_v32, %v307_v35 }
  0x96   : > { %954 = vmatpush3.msra.mxu0 %v1124_v11  ;;  %934 = vmatprep.mubr.msk.f32.mxu0 %vm1061_vm0, %v1060_v4 }
  0x97   : > { %v309_v38 = vand.u32 4294901760, %v308_v37  ;;  %955 = vmatprep.subr.mxu0 %v1060_v4 }
  0x98   : > { %971 = vmatmul.mubr.f32.vlgmr.msra.gmra.mxu1 %v297_v30  ;;  %956 = vmatpush3.msra.mxu0 %v1121_v10 }
  0x99   : > { %935 = vmatmul.mubr.f32.gmra.mxu0 %v309_v38  ;;  %973 = vmatprep.mubr.msk.f32.mxu1 %vm1061_vm0, %v1060_v4 }
  0x9a   : > { %937 = vmatprep.mubr.msk.f32.mxu0 %vm1061_vm0, %v1060_v4  ;;  %979 = vmatprep.subr.mxu0 %v1060_v4 }
  0x9b   : > { %993 = vmatpush3.msra.mxu1 %v1118_v9 }
  0x9c   : > { %974 = vmatmul.mubr.f32.gmra.mxu1 %v307_v35  ;;  %994 = vmatprep.subr.mxu1 %v1060_v4 }
  0x9d   : > { %938 = vmatmul.mubr.f32.gmra.mxu0 %v319_v40  ;;  %976 = vmatprep.mubr.msk.f32.mxu1 %vm1061_vm0, %v1060_v4 }
  0x9e   : > { %957 = vmatprep.mubr.msk.f32.mxu0 %vm1061_vm0, %v1060_v4  ;;  %995 = vmatpush3.msra.mxu1 %v1116_v8 }
  0xa0   : > { %977 = vmatmul.mubr.f32.gmra.mxu1 %v317_v36 }
  0xa1   : > { %958 = vmatmul.mubr.f32.vlgmr.msra.gmra.mxu0 %v296_v26  ;;  %996 = vmatprep.mubr.msk.f32.mxu1 %vm1061_vm0, %v1060_v4 }
  0xa2   : > { %980 = vmatpush3.msra.mxu0 %v356_v13  ;;  %960 = vmatprep.mubr.msk.f32.mxu0 %vm1061_vm0, %v1060_v4 }
  0xa3   : > { %981 = vmatprep.subr.mxu0 %v1060_v4 }
  0xa4   : > { %997 = vmatmul.mubr.msk.f32.vlgmr.msra.gmra.mxu1 %vm214_vm2, %v1141_v22  ;;  %982 = vmatpush3.msra.mxu0 %v363_v12 }
  0xa5   : > { %961 = vmatmul.mubr.f32.gmra.mxu0 %v306_v32  ;;  %999 = vmatprep.mubr.msk.f32.mxu1 %vm1061_vm0, %v1060_v4 }
  0xa6   : > { %963 = vmatprep.mubr.msk.f32.mxu0 %vm1061_vm0, %v1060_v4 }
  0xa8   : > { %1000 = vmatmul.mubr.msk.f32.gmra.mxu1 %vm214_vm2, %v883_v28 }
  0xa9   : > { %964 = vmatmul.mubr.f32.gmra.mxu0 %v316_v29  ;;  %1002 = vmatprep.mubr.msk.f32.mxu1 %vm1061_vm0, %v1060_v4 }
  0xaa   : > { %983 = vmatprep.mubr.msk.f32.mxu0 %vm1061_vm0, %v1060_v4 }
  0xac   : > { %1003 = vmatmul.mubr.msk.f32.gmra.mxu1 %vm214_vm2, %v1144_v23 }
  0xad   : > { %984 = vmatmul.mubr.msk.f32.vlgmr.msra.gmra.mxu0 %vm214_vm2, %v1141_v22 }
  0xae   : > { %986 = vmatprep.mubr.msk.f32.mxu0 %vm1061_vm0, %v1060_v4 }
  0xb1   : > { %987 = vmatmul.mubr.msk.f32.gmra.mxu0 %vm214_vm2, %v883_v28 }
  0xb2   : > { %989 = vmatprep.mubr.msk.f32.mxu0 %vm1061_vm0, %v1060_v4 }
  0xb5   : > { %990 = vmatmul.mubr.msk.f32.gmra.mxu0 %vm214_vm2, %v1144_v23 }
 0x14c   : > { %v402_v41 = vpop.f32.mrf.mxu1 }
 0x14e   : > { %v946_v42 = vpop.f32.mrf.mxu1 }
 0x150   : > { %v408_v43 = vpop.f32.mrf.mxu1 }
 0x152   : > { %v949_v44 = vpop.f32.mrf.mxu1 }
 0x154   : > { %v414_v45 = vpop.f32.mrf.mxu1 }
 0x155   : > { %v301_v46 = vpop.f32.mrf.mxu0 }
 0x156   : > { %v952_v47 = vpop.f32.mrf.mxu1  ;;  %v403_v63 = vadd.f32 %v402_v41, %v301_v46 }
 0x157   : > { %v933_v48 = vpop.f32.mrf.mxu0 }
 0x158   : > { %v579_v49 = vpop.f32.mrf.mxu1 }
 0x159   : > { %v311_v50 = vpop.f32.mrf.mxu0 }
 0x15a   : > { %v972_v51 = vpop.f32.mrf.mxu1  ;;  %v409_v5 = vadd.f32 %v408_v43, %v311_v50 }
 0x15b   : > { %v936_v52 = vpop.f32.mrf.mxu0 }
 0x15c   : > { %v587_v53 = vpop.f32.mrf.mxu1 }
 0x15d   : > { %v321_v54 = vpop.f32.mrf.mxu0 }
 0x15e   : > { %v975_v55 = vpop.f32.mrf.mxu1  ;;  %v415_v12 = vadd.f32 %v414_v45, %v321_v54 }
 0x15f   : > { %v939_v56 = vpop.f32.mrf.mxu0 }
 0x160   : > { %v595_v57 = vpop.f32.mrf.mxu1 }
 0x161   : > { %v490_v58 = vpop.f32.mrf.mxu0 }
 0x162   : > { %v978_v59 = vpop.f32.mrf.mxu1  ;;  %v491_v2 = vadd.f32 %v490_v58, %v403_v63 }
 0x163   : > { %v959_v60 = vpop.f32.mrf.mxu0 }
 0x164   : > { %v757_v61 = vpop.f32.mrf.mxu1  ;;  %v580_v10 = vadd.f32 %v579_v49, %v491_v2 }
 0x165   : > { %v497_v62 = vpop.f32.mrf.mxu0 }
 0x166   : > { %v998_v0 = vpop.f32.mrf.mxu1  ;;  %v498_v8 = vadd.f32 %v497_v62, %v409_v5 }
 0x167   : > { %v962_v1 = vpop.f32.mrf.mxu0 }
 0x168   : > { %v763_v3 = vpop.f32.mrf.mxu1  ;;  %v588_v18 = vadd.f32 %v587_v53, %v498_v8 }
 0x169   : > { %v504_v4 = vpop.f32.mrf.mxu0 }
 0x16a   : > { %v1001_v6 = vpop.f32.mrf.mxu1  ;;  %v505_v16 = vadd.f32 %v504_v4, %v415_v12 }
 0x16b   : > { %v965_v7 = vpop.f32.mrf.mxu0 }
 0x16c   : > { %v769_v9 = vpop.f32.mrf.mxu1  ;;  %v596_v23 = vadd.f32 %v595_v57, %v505_v16 }
 0x16d   : > { %v672_v11 = vpop.f32.mrf.mxu0 }
 0x16e   : > { %v673_v13 = vadd.f32 %v672_v11, %v580_v10  ;;  %v1004_v14 = vpop.f32.mrf.mxu1 }
 0x16f   : > { %v985_v15 = vpop.f32.mrf.mxu0 }
 0x170   : > { %v758_v17 = vadd.f32 %v757_v61, %v673_v13 }
 0x171   : > { %v678_v19 = vpop.f32.mrf.mxu0 }
 0x172   : > { %774 = vst.msk [vmem:[%s187_s26] sm:$0xff] %vm773_vm6, %v758_v17  ;;  %v679_v20 = vadd.f32 %v678_v19, %v588_v18 }
 0x173   : > { %v988_v21 = vpop.f32.mrf.mxu0 }
 0x174   : > { %v764_v22 = vadd.f32 %v763_v3, %v679_v20 }
 0x175   : > { %v684_v24 = vpop.f32.mrf.mxu0 }
 0x176   : > { %775 = vst.msk [vmem:[%s187_s26 + $0x8] sm:$0xff] %vm773_vm6, %v764_v22  ;;  %v685_v25 = vadd.f32 %v684_v24, %v596_v23 }
 0x177   : > { %v991_v26 = vpop.f32.mrf.mxu0 }
 0x178   : > { %v770_v27 = vadd.f32 %v769_v9, %v685_v25 }
 0x17a   : > { %776 = vst.msk [vmem:[%s187_s26 + $0x10] sm:$0xff] %vm773_vm6, %v770_v27 }
 0x17b PF: > { %s12_s11 = sadd.s32 1, %s1057_s11   ;;  %s1234_s9 = smov %s1053_s10 }
 0x17c   : > { %p9_p5 = scmp.ge.s32.totalorder %s12_s11, 4   ;;  %s1235_s10 = smov %s1237_s12 }
 0x17e   :  { %11 = sbr.rel (!%p9_p5) target bundleno = 2 (0x2), region = 61 }

</bundles_post_ra>
